<compile_context>
chip_gen: v6e
topology: v6e:2x2x1
jax: 0.10.0
libtpu: 0.0.40
codegen_flags: <defaults>
</compile_context>

<pallas_src>
import functools
import math

import jax
import jax.numpy as jnp
from jax.experimental import pallas as pl
from jax.experimental.pallas import tpu as pltpu


# ----------------------------------------------------------------------------
# Pallas kernel
# ----------------------------------------------------------------------------
def _attn_kernel(l_ref, g_ref, w_ref, c_ref, gout_ref, *, normalize_attn, inv_s):
    # l_ref/g_ref: (BT, C, S)  w_ref: (C, 1)  c_ref: (BT, 1, S)  gout_ref: (BT, 1, C)
    l = l_ref[...]
    x = l + g_ref[...]                                        # (BT, C, S)

    # 1x1 conv (bias=False) producing one channel: weighted sum over C (sublanes).
    scores = jnp.sum(x * w_ref[...], axis=1, keepdims=True)   # (BT, 1, S)  lane-dense
    c_ref[...] = scores                                       # pre-softmax score map

    if normalize_attn:
        # softmax over the spatial (lane) axis
        m = jnp.max(scores, axis=-1, keepdims=True)           # (BT, 1, 1)
        e = jnp.exp(scores - m)                                # EUP
        denom = jnp.sum(e, axis=-1, keepdims=True)             # (BT, 1, 1)
        a = e * pl.reciprocal(denom, approx=True)              # EUP approx recip
    else:
        a = jax.nn.sigmoid(scores)                             # (BT, 1, S)

    # attention-weighted spatial sum of l as a batched matmul on the MXU:
    # gout[b, 0, c] = sum_s a[b, 0, s] * l[b, c, s]
    gvec = jnp.einsum("bos,bcs->boc", a, l,
                      preferred_element_type=jnp.float32)      # (BT, 1, C)
    if not normalize_attn:
        gvec = gvec * inv_s                                    # adaptive_avg_pool2d -> mean
    gout_ref[...] = gvec


# ----------------------------------------------------------------------------
# Wrapper
# ----------------------------------------------------------------------------
def _pick_batch_tile(n, c, s, budget_bytes=2 << 20):
    """Largest divisor of n whose (C,S) f32 block fits the per-block VMEM budget.

    Keeps double-buffered l+g blocks <= ~8 MiB (safe under v5e's 16 MiB scoped
    default) and, when possible, leaves >= 2 grid steps so v7x's two TensorCores
    both get work via the 'parallel' batch axis.
    """
    per_batch = max(c * s * 4, 1)
    cap = max(1, min(n, budget_bytes // per_batch))
    if n >= 2:
        cap = min(cap, max(1, n // 2))
    for b in range(cap, 0, -1):
        if n % b == 0:
            return b
    return 1


def adaptive_linear_attention(l, g, w, normalize_attn=True):
    """Forward pass of Adaptive_LinearAttentionBlock.

    l, g : (N, C, W, H) float feature maps (PyTorch NCHW).
    w    : Conv2d(C, 1, kernel_size=1, bias=False) weight; any shape with C elems
           (e.g. PyTorch (1, C, 1, 1)).
    Returns (c: (N, 1, W, H) raw score map, g_out: (N, C)).
    """
    N, C, W, H = l.shape
    S = W * H
    lf = jnp.asarray(l, jnp.float32).reshape(N, C, S)
    gf = jnp.asarray(g, jnp.float32).reshape(N, C, S)
    w2 = jnp.asarray(w, jnp.float32).reshape(C, 1)

    bt = _pick_batch_tile(N, C, S)
    grid = (N // bt,)

    kernel = functools.partial(
        _attn_kernel, normalize_attn=normalize_attn, inv_s=1.0 / float(S)
    )

    c, gout = pl.pallas_call(
        kernel,
        out_shape=(
            jax.ShapeDtypeStruct((N, 1, S), jnp.float32),
            jax.ShapeDtypeStruct((N, 1, C), jnp.float32),
        ),
        grid=grid,
        in_specs=[
            pl.BlockSpec((bt, C, S), lambda n: (n, 0, 0)),
            pl.BlockSpec((bt, C, S), lambda n: (n, 0, 0)),
            pl.BlockSpec((C, 1), lambda n: (0, 0)),
        ],
        out_specs=(
            pl.BlockSpec((bt, 1, S), lambda n: (n, 0, 0)),
            pl.BlockSpec((bt, 1, C), lambda n: (n, 0, 0)),
        ),
        compiler_params=pltpu.CompilerParams(
            dimension_semantics=("parallel",),
            vmem_limit_bytes=32 * 1024 * 1024,
        ),
    )(lf, gf, w2)

    return c.reshape(N, 1, W, H), gout.reshape(N, C)


# ----------------------------------------------------------------------------
# Pure-JAX reference (mirrors the PyTorch module) for a correctness check
# ----------------------------------------------------------------------------
def reference_forward(l, g, w, normalize_attn=True):
    N, C, W, H = l.shape
    x = l + g
    c = jnp.sum(x * w.reshape(1, C, 1, 1), axis=1, keepdims=True)     # (N,1,W,H)
    if normalize_attn:
        a = jax.nn.softmax(c.reshape(N, 1, -1), axis=2).reshape(N, 1, W, H)
    else:
        a = jax.nn.sigmoid(c)
    gm = a * l
    if normalize_attn:
        gv = gm.reshape(N, C, -1).sum(axis=2)
    else:
        gv = jnp.mean(gm, axis=(2, 3))
    return c, gv


if __name__ == "__main__":
    key = jax.random.PRNGKey(0)
    k1, k2, k3 = jax.random.split(key, 3)

    # Small shapes consistent with the module: N, C, W, H (spatial flattened -> S=128).
    N, C, W, H = 8, 128, 8, 16
    l = jax.random.normal(k1, (N, C, W, H), jnp.float32)
    g = jax.random.normal(k2, (N, C, W, H), jnp.float32)
    # Conv2d(C, 1, 1, bias=False) weight in PyTorch layout (1, C, 1, 1).
    w = jax.random.normal(k3, (1, C, 1, 1), jnp.float32) / math.sqrt(C)

    fwd = jax.jit(functools.partial(adaptive_linear_attention, normalize_attn=True))
    c, gout = fwd(l, g, w)
    jax.block_until_ready((c, gout))

    assert c.shape == (N, 1, W, H)
    assert gout.shape == (N, C)

    c_ref, g_ref = reference_forward(l, g, w, normalize_attn=True)
    # c is an exact f32 elementwise path -> tight tolerance; g goes through the
    # MXU matmul + approx EUP reciprocal -> looser tolerance.
    assert bool(jnp.allclose(c, c_ref, rtol=1e-3, atol=1e-3)), (
        "c mismatch", float(jnp.max(jnp.abs(c - c_ref))))
    assert bool(jnp.allclose(gout, g_ref, rtol=2e-2, atol=2e-2)), (
        "g mismatch", float(jnp.max(jnp.abs(gout - g_ref))))

    print("KERNEL_OK")
</pallas_src>

<mosaic_0001>
module attributes {stable_mosaic.version = 11 : i64} {
  func.func @_attn_kernel(%arg0: i32, %arg1: memref<4x128x128xf32, #tpu.memory_space<vmem>>, %arg2: memref<4x128x128xf32, #tpu.memory_space<vmem>>, %arg3: memref<128x1xf32, #tpu.memory_space<vmem>>, %arg4: memref<4x1x128xf32, #tpu.memory_space<vmem>>, %arg5: memref<4x1x128xf32, #tpu.memory_space<vmem>>) attributes {dimension_semantics = [#tpu.dimension_semantics<parallel>], iteration_bounds = array<i64: 2>, scalar_prefetch = 0 : i64, scratch_operands = 0 : i64, tpu.core_type = #tpu.core_type<tc>, window_params = [{transform_indices = @transform_0, window_bounds = array<i64: 4, 128, 128>}, {transform_indices = @transform_1, window_bounds = array<i64: 4, 128, 128>}, {pipeline_mode = #tpu.pipeline_mode<synchronous>, transform_indices = @transform_2, window_bounds = array<i64: 128, 1>}, {transform_indices = @transform_3, window_bounds = array<i64: 4, 1, 128>}, {transform_indices = @transform_4, window_bounds = array<i64: 4, 1, 128>}]} {
    %c0 = arith.constant 0 : index
    %c0_0 = arith.constant 0 : index
    %c0_1 = arith.constant 0 : index
    %0 = vector.load %arg1[%c0, %c0_0, %c0_1] : memref<4x128x128xf32, #tpu.memory_space<vmem>>, vector<4x128x128xf32>
    %c0_2 = arith.constant 0 : index
    %c0_3 = arith.constant 0 : index
    %c0_4 = arith.constant 0 : index
    %1 = vector.load %arg2[%c0_2, %c0_3, %c0_4] : memref<4x128x128xf32, #tpu.memory_space<vmem>>, vector<4x128x128xf32>
    %2 = arith.addf %0, %1 : vector<4x128x128xf32>
    %c0_5 = arith.constant 0 : index
    %c0_6 = arith.constant 0 : index
    %3 = vector.load %arg3[%c0_5, %c0_6] : memref<128x1xf32, #tpu.memory_space<vmem>>, vector<128x1xf32>
    %4 = vector.shape_cast %3 : vector<128x1xf32> to vector<1x128x1xf32>
    %5 = vector.broadcast %4 : vector<1x128x1xf32> to vector<4x128x128xf32>
    %6 = arith.mulf %2, %5 : vector<4x128x128xf32>
    %cst = arith.constant dense<0.000000e+00> : vector<4x128xf32>
    %7 = vector.multi_reduction <add>, %6, %cst [1] : vector<4x128x128xf32> to vector<4x128xf32>
    %8 = vector.shape_cast %7 : vector<4x128xf32> to vector<4x1x128xf32>
    %c0_7 = arith.constant 0 : index
    %c0_8 = arith.constant 0 : index
    %c0_9 = arith.constant 0 : index
    %9 = vector.load %arg4[%c0_7, %c0_8, %c0_9] : memref<4x1x128xf32, #tpu.memory_space<vmem>>, vector<4x1x128xf32>
    tpu.vector_store %arg4[%c0_7, %c0_8, %c0_9], %8 {strides = array<i32>} : memref<4x1x128xf32, #tpu.memory_space<vmem>>, vector<4x1x128xf32>,
    %cst_10 = arith.constant dense<0xFF800000> : vector<4x1xf32>
    %10 = vector.multi_reduction <maximumf>, %8, %cst_10 [2] : vector<4x1x128xf32> to vector<4x1xf32>
    %11 = vector.shape_cast %10 : vector<4x1xf32> to vector<4x1x1xf32>
    %12 = vector.broadcast %11 : vector<4x1x1xf32> to vector<4x1x128xf32>
    %13 = arith.subf %8, %12 : vector<4x1x128xf32>
    %14 = math.exp %13 : vector<4x1x128xf32>
    %cst_11 = arith.constant dense<0.000000e+00> : vector<4x1xf32>
    %15 = vector.multi_reduction <add>, %14, %cst_11 [2] : vector<4x1x128xf32> to vector<4x1xf32>
    %16 = vector.shape_cast %15 : vector<4x1xf32> to vector<4x1x1xf32>
    %17 = tpu.reciprocal %16 {approx = true} : vector<4x1x1xf32> -> vector<4x1x1xf32>
    %18 = vector.broadcast %17 : vector<4x1x1xf32> to vector<4x1x128xf32>
    %19 = arith.mulf %14, %18 : vector<4x1x128xf32>
    "tpu.trace_start"() <{level = 10 : i32, message = "bos,bcs->boc"}> : () -> ()
    %cst_12 = arith.constant dense<0.000000e+00> : vector<4x1x128xf32>
    %20 = tpu.matmul %19, %0, %cst_12 {dimension_numbers = #tpu.dot_dimension_numbers<[2], [2], [1], [1], [0, 0, 0, 1, 1, 1], [0], [0]>} : vector<4x1x128xf32>, vector<4x128x128xf32>, vector<4x1x128xf32> -> vector<4x1x128xf32>
    "tpu.trace_stop"() : () -> ()
    %c0_13 = arith.constant 0 : index
    %c0_14 = arith.constant 0 : index
    %c0_15 = arith.constant 0 : index
    %21 = vector.load %arg5[%c0_13, %c0_14, %c0_15] : memref<4x1x128xf32, #tpu.memory_space<vmem>>, vector<4x1x128xf32>
    tpu.vector_store %arg5[%c0_13, %c0_14, %c0_15], %20 {strides = array<i32>} : memref<4x1x128xf32, #tpu.memory_space<vmem>>, vector<4x1x128xf32>,
    return
  }
  func.func @transform_0(%arg0: i32) -> (i32, i32, i32) {
    %c0_i32 = arith.constant 0 : i32
    %c0_i32_0 = arith.constant 0 : i32
    %c0_i32_1 = arith.constant 0 : i32
    return %arg0, %c0_i32, %c0_i32_0 : i32, i32, i32
  }
  func.func @transform_1(%arg0: i32) -> (i32, i32, i32) {
    %c0_i32 = arith.constant 0 : i32
    %c0_i32_0 = arith.constant 0 : i32
    %c0_i32_1 = arith.constant 0 : i32
    return %arg0, %c0_i32, %c0_i32_0 : i32, i32, i32
  }
  func.func @transform_2(%arg0: i32) -> (i32, i32) {
    %c0_i32 = arith.constant 0 : i32
    %c0_i32_0 = arith.constant 0 : i32
    %c0_i32_1 = arith.constant 0 : i32
    return %c0_i32, %c0_i32_0 : i32, i32
  }
  func.func @transform_3(%arg0: i32) -> (i32, i32, i32) {
    %c0_i32 = arith.constant 0 : i32
    %c0_i32_0 = arith.constant 0 : i32
    %c0_i32_1 = arith.constant 0 : i32
    return %arg0, %c0_i32, %c0_i32_0 : i32, i32, i32
  }
  func.func @transform_4(%arg0: i32) -> (i32, i32, i32) {
    %c0_i32 = arith.constant 0 : i32
    %c0_i32_0 = arith.constant 0 : i32
    %c0_i32_1 = arith.constant 0 : i32
    return %arg0, %c0_i32, %c0_i32_0 : i32, i32, i32
  }
}

</mosaic_0001>

<bundles_post_ra>
// kernel: adaptive_linear_attention.1
= control target key start
LH: loop header
LB: loop body
LE: loop exit
PB: predicated region body
PF: predicated region fallthrough
CT: control target
= control target key end

     0   :  { %10 = vsyncpa [#allocation3], 0  ;;  %s2329_s0 = inlined_call_operand.vmem [shape: f32[8,128,128], index: 0, kind: input, shape index: {}]   ;;  %s2330_s1 = inlined_call_operand.vmem [shape: f32[8,128,128], index: 1, kind: input, shape index: {}]   ;;  %s2331_s2 = inlined_call_operand.vmem [shape: f32[128,1], index: 2, kind: input, shape index: {}]   ;;  %s2332_s3 = inlined_call_operand.vmem [shape: f32[8,1,128], index: 3, kind: output, shape index: {0}]   ;;  %s2333_s4 = inlined_call_operand.hbm [shape: f32[8,1,128], index: 4, kind: output, shape index: {1}]  }
   0x1   :  { %12 = vsyncpa [#allocation3 + $0x1], 0  ;;  %s1502_s15 = smov 0   ;;  %s1504_s16 = smov 0  }
   0x2   :  { %s1506_s17 = smov 0   ;;  %s1508_s18 = smov 0  }
   0x3 LB: > { %s1523_s19 = sadd.s32 4294967295, %s1469_s18   ;;  %s1115_s20 = sadd.s32 4294967294, %s1469_s18   ;;  %s1469_s18 = sphi %s1508_s18, %s2552_s18   ;;  %s1465_s17 = sphi %s1506_s17, %s2551_s17   ;;  %s1461_s16 = sphi %s1504_s16, %s2550_s16   ;;  %s1457_s15 = sphi %s1502_s15, %s2549_s15  }
   0x4   : > { %s1527_s21 = sadd.s32 1, %s1469_s18   ;;  %s124_s22 = sadd.s32 1, %s1465_s17 }
   0x5   : > { %s121_s23 = ssub.s32 %s1469_s18, %s1527_s21  ;;  %p134_p0 = scmp.ne.s32.totalorder %s1465_s17, %s1461_s16 }
   0x6   : > { %p122_p1 = scmp.eq.s32.totalorder %s121_s23, 0  ;;  %p135_p2 = scmp.eq.s32.totalorder %s1523_s19, 1 }
   0x7   : > { %p140_p3 = scmp.ne.s32.totalorder %s1461_s16, %s1457_s15  ;;  %p141_p4 = scmp.eq.s32.totalorder %s1115_s20, 1 }
   0x8   : > { %s1538_s24 = scalar_select %p122_p1, %s1465_s17, %s124_s22  }
   0x9   : > { %p1540_p5 = por %p135_p2, %p134_p0  ;;  %p1544_p6 = por %p141_p4, %p140_p3 }
   0xa   : > { %p1118_p7 = scmp.ge.s32.totalorder %s1469_s18, 1  ;;  %p182_p8 = scmp.lt.s32.totalorder %s1469_s18, 3 }
   0xc   : > { %p183_p9 = pnand %p1118_p7, %p182_p8 }
   0xe   : > { %186 = sbr.rel (%p183_p9) target bundleno = 776 (0x308), region = 32 }
  0x13   : > { %v433_v0 = vld [vmem:[%s2331_s2 + $0x10] sm:$0xff]  ;;  %v431_v1 = vld [vmem:[%s2331_s2] sm:$0xff]  ;;  %v1471_v2 = vmov 0   ;;  %v434_v3 = vld [vmem:[%s2331_s2 + $0x18] sm:$0xff]  ;;  %s1120_s22 = sshll.u32 %s1523_s19, 2  ;;  %vm1473_vm0 = vmmov 0  }
  0x14   : > { %1388 = vset.pattern.permute.xlu1 %v1471_v2  ;;  %1387 = vset.pattern.permute.xlu0 %v1471_v2  ;;  %v432_v4 = vld [vmem:[%s2331_s2 + $0x8] sm:$0xff]  ;;  %v435_v6 = vld [vmem:[%s2331_s2 + $0x20] sm:$0xff]  ;;  %v438_v7 = vld [vmem:[%s2331_s2 + $0x38] sm:$0xff]  ;;  %p220_p10 = scmp.lt.s32.totalorder %s1120_s22, 7  ;;  %s216_s10 = sand.u32 1, %s1461_s16  }
  0x15   : > { %459 = vperm.xlu1 %1388, %v433_v0   ;;  %449 = vperm.xlu0 %1387, %v431_v1   ;;  %v436_v5 = vld [vmem:[%s2331_s2 + $0x28] sm:$0xff]  ;;  %v437_v8 = vld [vmem:[%s2331_s2 + $0x30] sm:$0xff]  ;;  %v439_v10 = vld [vmem:[%s2331_s2 + $0x40] sm:$0xff]  ;;  %s1119_s11 = sshll.u32 %s216_s10, 2  ;;  %s1134_s14 = sshll.u32 %s1523_s19, 6 }
  0x16   : > { %v440_v9 = vld [vmem:[%s2331_s2 + $0x48] sm:$0xff]  ;;  %v442_v11 = vld [vmem:[%s2331_s2 + $0x58] sm:$0xff]  ;;  %v441_v12 = vld [vmem:[%s2331_s2 + $0x50] sm:$0xff]  ;;  %s2554_s22 = smov (!%p220_p10, %s1120_s22), 7  ;;  %s218_s12 = scalar_lea.vmem [#allocation2], %s1119_s11 }
  0x17   : > { %v444_v13 = vld [vmem:[%s2331_s2 + $0x68] sm:$0xff]  ;;  %v443_v14 = vld [vmem:[%s2331_s2 + $0x60] sm:$0xff]  ;;  %v446_v15 = vld [vmem:[%s2331_s2 + $0x78] sm:$0xff]  ;;  %s1132_s23 = sshll.u32 %s2554_s22, 7  ;;  %s236_s9 = scalar_lea.vmem %s2332_s3, %s2554_s22 }
  0x18   : > { %v445_v16 = vld [vmem:[%s2331_s2 + $0x70] sm:$0xff]  ;;  %s1605_s29 = scalar_lea.vmem %s2329_s0, %s1132_s23  ;;  %s1610_s6 = scalar_lea.vmem %s2330_s1, %s1132_s23 }
  0x19   : > { %464 = vperm.xlu1 %1388, %v434_v3   ;;  %454 = vperm.xlu0 %1387, %v432_v4   ;;  %v1613_v17 = vld [vmem:[%s1605_s29 + $0x10] sm:$0xff]  ;;  %v1625_v25 = vld [vmem:[%s1605_s29] sm:$0xff]  ;;  %v1637_v33 = vld [vmem:[%s1605_s29 + $0x18] sm:$0xff]  ;;  %s1021_s13 = sshll.u32 %s218_s12, 4  ;;  %s2287_s23 = scalar_lea.hbm %s2333_s4, %s1134_s14  ;;  %s2282_s13 = int_to_ptr.vmem [resolvable:$true] %s1021_s13 }
  0x1a   : > { %2391 = vst [vmem:[#allocation5_spill] sm:$0xff] %v1613_v17  ;;  %v1616_v18 = vld [vmem:[%s1605_s29 + $0x90] sm:$0xff]  ;;  %2393 = vst [vmem:[#allocation7_spill] sm:$0xff] %v1625_v25  ;;  %v1628_v26 = vld [vmem:[%s1605_s29 + $0x80] sm:$0xff]  ;;  %s2289_s27 = scalar_lea.sflag [#allocation3], %s216_s10  ;;  %s1409_s28 = scalar_lea.vmem %s2282_s13, 64 }
  0x1b   : > { %2392 = vst [vmem:[#allocation6_spill] sm:$0xff] %v1616_v18  ;;  %v273_v19 = vld [vmem:[%s1605_s29 + $0x110] sm:$0xff]  ;;  %2394 = vst [vmem:[#allocation8_spill] sm:$0xff] %v1628_v26  ;;  %v271_v27 = vld [vmem:[%s1605_s29 + $0x100] sm:$0xff]  ;;  %p1410_p11 = scmp.ne.s32.totalorder %s2282_s13, %s1409_s28  ;;  %s1474_s19 = smov [#allocation2]  }
  0x1c   : > { %v289_v20 = vld [vmem:[%s1605_s29 + $0x190] sm:$0xff]  ;;  %v287_v28 = vld [vmem:[%s1605_s29 + $0x180] sm:$0xff]  ;;  %2395 = vst [vmem:[#allocation9_spill] sm:$0xff] %v1637_v33  ;;  %v1640_v34 = vld [vmem:[%s1605_s29 + $0x98] sm:$0xff] }
  0x1d   : > { %474 = vperm.xlu1 %1388, %v436_v5   ;;  %469 = vperm.xlu0 %1387, %v435_v6   ;;  %v305_v21 = vld [vmem:[%s1610_s6 + $0x10] sm:$0xff]  ;;  %v303_v29 = vld [vmem:[%s1610_s6] sm:$0xff]  ;;  %2396 = vst [vmem:[#allocation10_spill] sm:$0xff] %v1640_v34  ;;  %v1643_v35 = vld [vmem:[%s1605_s29 + $0x118] sm:$0xff]  ;;  %p1411_p12 = pnand %p1410_p11, %p1540_p5 }
  0x1e   : > { %v321_v22 = vld [vmem:[%s1610_s6 + $0x90] sm:$0xff]  ;;  %v319_v30 = vld [vmem:[%s1610_s6 + $0x80] sm:$0xff]  ;;  %2397 = vst [vmem:[#allocation11_spill] sm:$0xff] %v1643_v35  ;;  %v1646_v36 = vld [vmem:[%s1605_s29 + $0x198] sm:$0xff]  ;;  %v1685_v57 = vadd.f32 %v305_v21, %v1613_v17  ;;  %v1711_v5 = vadd.f32 %v303_v29, %v1625_v25 }
  0x1f   : > { %v337_v23 = vld [vmem:[%s1610_s6 + $0x110] sm:$0xff]  ;;  %v335_v31 = vld [vmem:[%s1610_s6 + $0x100] sm:$0xff]  ;;  %2398 = vst [vmem:[#allocation12_spill] sm:$0xff] %v1646_v36  ;;  %v306_v37 = vld [vmem:[%s1610_s6 + $0x18] sm:$0xff]  ;;  %v1688_v58 = vadd.f32 %v321_v22, %v1616_v18  ;;  %v1714_v6 = vadd.f32 %v319_v30, %v1628_v26  ;;  %p1412_p13 = pneg %p1411_p12 }
  0x20   : > { %v353_v24 = vld [vmem:[%s1610_s6 + $0x190] sm:$0xff]  ;;  %v351_v32 = vld [vmem:[%s1610_s6 + $0x180] sm:$0xff]  ;;  %v322_v38 = vld [vmem:[%s1610_s6 + $0x98] sm:$0xff]  ;;  %v1690_v59 = vadd.f32 %v337_v23, %v273_v19  ;;  %v1737_v19 = vadd.f32 %v306_v37, %v1637_v33 }
  0x21   : > { %484 = vperm.xlu1 %1388, %v438_v7   ;;  %479 = vperm.xlu0 %1387, %v437_v8   ;;  %v338_v39 = vld [vmem:[%s1610_s6 + $0x118] sm:$0xff]  ;;  %v1653_v41 = vld [vmem:[%s1605_s29 + $0x8] sm:$0xff]  ;;  %v1692_v60 = vadd.f32 %v353_v24, %v289_v20  ;;  %v1695_v61 = vld [vmem:[%s1605_s29 + $0x20] sm:$0xff]  ;;  %v1716_v7 = vadd.f32 %v335_v31, %v271_v27  ;;  %v1718_v8 = vadd.f32 %v351_v32, %v287_v28 }
  0x22   : > { %v354_v40 = vld [vmem:[%s1610_s6 + $0x198] sm:$0xff]  ;;  %2399 = vst [vmem:[#allocation13_spill] sm:$0xff] %v1653_v41  ;;  %v1656_v42 = vld [vmem:[%s1605_s29 + $0x88] sm:$0xff]  ;;  %2407 = vst [vmem:[#allocation21_spill] sm:$0xff] %v1695_v61  ;;  %v1740_v20 = vadd.f32 %v322_v38, %v1640_v34  ;;  %v1743_v21 = vadd.f32 %v338_v39, %v1643_v35 }
  0x23   : > { %2400 = vst [vmem:[#allocation14_spill] sm:$0xff] %v1656_v42  ;;  %v1659_v43 = vld [vmem:[%s1605_s29 + $0x108] sm:$0xff]  ;;  %v1698_v62 = vld [vmem:[%s1605_s29 + $0xa0] sm:$0xff]  ;;  %v1746_v22 = vadd.f32 %v354_v40, %v1646_v36  ;;  %v1749_v23 = vld [vmem:[%s1605_s29 + $0x30] sm:$0xff] }
  0x24   : > { %2401 = vst [vmem:[#allocation15_spill] sm:$0xff] %v1659_v43  ;;  %v1662_v44 = vld [vmem:[%s1605_s29 + $0x188] sm:$0xff]  ;;  %2408 = vst [vmem:[#allocation22_spill] sm:$0xff] %v1698_v62  ;;  %v1701_v63 = vld [vmem:[%s1605_s29 + $0x120] sm:$0xff] }
  0x25   : > { %494 = vperm.xlu1 %1388, %v440_v9   ;;  %489 = vperm.xlu0 %1387, %v439_v10   ;;  %2402 = vst [vmem:[#allocation16_spill] sm:$0xff] %v1662_v44  ;;  %v304_v45 = vld [vmem:[%s1610_s6 + $0x8] sm:$0xff]  ;;  %2409 = vst [vmem:[#allocation23_spill] sm:$0xff] %v1701_v63  ;;  %v1704_v0 = vld [vmem:[%s1605_s29 + $0x1a0] sm:$0xff] }
  0x26   : > { %v320_v46 = vld [vmem:[%s1610_s6 + $0x88] sm:$0xff]  ;;  %2410 = vst [vmem:[#allocation24_spill] sm:$0xff] %v1704_v0  ;;  %v307_v1 = vld [vmem:[%s1610_s6 + $0x20] sm:$0xff]  ;;  %v1721_v9 = vld [vmem:[%s1605_s29 + $0x38] sm:$0xff]  ;;  %v1765_v37 = vadd.f32 %v304_v45, %v1653_v41 }
  0x27   : > { %v336_v47 = vld [vmem:[%s1610_s6 + $0x108] sm:$0xff]  ;;  %v323_v2 = vld [vmem:[%s1610_s6 + $0xa0] sm:$0xff]  ;;  %2411 = vst [vmem:[#allocation25_spill] sm:$0xff] %v1721_v9  ;;  %v1724_v10 = vld [vmem:[%s1605_s29 + $0xb8] sm:$0xff]  ;;  %v1768_v38 = vadd.f32 %v320_v46, %v1656_v42 }
  0x28   : > { %v352_v48 = vld [vmem:[%s1610_s6 + $0x188] sm:$0xff]  ;;  %v339_v3 = vld [vmem:[%s1610_s6 + $0x120] sm:$0xff]  ;;  %2412 = vst [vmem:[#allocation26_spill] sm:$0xff] %v1724_v10  ;;  %2415 = vst [vmem:[#allocation29_spill] sm:$0xff] %v1749_v23  ;;  %v1771_v39 = vadd.f32 %v336_v47, %v1659_v43 }
  0x29   : > { %504 = vperm.xlu1 %1388, %v442_v11   ;;  %499 = vperm.xlu0 %1387, %v441_v12   ;;  %v1669_v49 = vld [vmem:[%s1605_s29 + $0x28] sm:$0xff]  ;;  %v355_v4 = vld [vmem:[%s1610_s6 + $0x1a0] sm:$0xff]  ;;  %v1727_v11 = vld [vmem:[%s1605_s29 + $0x138] sm:$0xff]  ;;  %v1774_v40 = vadd.f32 %v352_v48, %v1662_v44 }
  0x2a   : > { %2403 = vst [vmem:[#allocation17_spill] sm:$0xff] %v1669_v49  ;;  %v1672_v50 = vld [vmem:[%s1605_s29 + $0xa8] sm:$0xff]  ;;  %2413 = vst [vmem:[#allocation27_spill] sm:$0xff] %v1727_v11  ;;  %v1730_v12 = vld [vmem:[%s1605_s29 + $0x1b8] sm:$0xff] }
  0x2b   : > { %2404 = vst [vmem:[#allocation18_spill] sm:$0xff] %v1672_v50  ;;  %v1675_v51 = vld [vmem:[%s1605_s29 + $0x128] sm:$0xff]  ;;  %2414 = vst [vmem:[#allocation28_spill] sm:$0xff] %v1730_v12  ;;  %v1752_v24 = vld [vmem:[%s1605_s29 + $0xb0] sm:$0xff] }
  0x2c   : > { %2405 = vst [vmem:[#allocation19_spill] sm:$0xff] %v1675_v51  ;;  %v1678_v52 = vld [vmem:[%s1605_s29 + $0x1a8] sm:$0xff]  ;;  %2416 = vst [vmem:[#allocation30_spill] sm:$0xff] %v1752_v24  ;;  %v1755_v27 = vld [vmem:[%s1605_s29 + $0x130] sm:$0xff] }
  0x2d   : > { %514 = vperm.xlu1 %1388, %v444_v13   ;;  %509 = vperm.xlu0 %1387, %v443_v14   ;;  %2406 = vst [vmem:[#allocation20_spill] sm:$0xff] %v1678_v52  ;;  %v308_v53 = vld [vmem:[%s1610_s6 + $0x28] sm:$0xff]  ;;  %v310_v13 = vld [vmem:[%s1610_s6 + $0x38] sm:$0xff]  ;;  %2417 = vst [vmem:[#allocation31_spill] sm:$0xff] %v1755_v27 }
  0x2e   : > { %v324_v54 = vld [vmem:[%s1610_s6 + $0xa8] sm:$0xff]  ;;  %v326_v14 = vld [vmem:[%s1610_s6 + $0xb8] sm:$0xff]  ;;  %v1758_v28 = vld [vmem:[%s1605_s29 + $0x1b0] sm:$0xff]  ;;  %v1793_v48 = vadd.f32 %v308_v53, %v1669_v49  ;;  %v1830_v49 = vadd.f32 %v355_v4, %v1704_v0  ;;  %v1849_v4 = vadd.f32 %v310_v13, %v1721_v9 }
  0x2f   : > { %v340_v55 = vld [vmem:[%s1610_s6 + $0x128] sm:$0xff]  ;;  %2418 = vst [vmem:[#allocation32_spill] sm:$0xff] %v1758_v28  ;;  %v309_v29 = vld [vmem:[%s1610_s6 + $0x30] sm:$0xff]  ;;  %v1796_v44 = vadd.f32 %v324_v54, %v1672_v50  ;;  %v1805_v18 = vld [vmem:[%s1605_s29 + $0x40] sm:$0xff]  ;;  %v1827_v50 = vadd.f32 %v339_v3, %v1701_v63  ;;  %v1852_v0 = vadd.f32 %v326_v14, %v1724_v10 }
  0x30   : > { %v356_v56 = vld [vmem:[%s1610_s6 + $0x1a8] sm:$0xff]  ;;  %v325_v30 = vld [vmem:[%s1610_s6 + $0xb0] sm:$0xff]  ;;  %2423 = vst [vmem:[#allocation37_spill] sm:$0xff] %v1793_v48  ;;  %v1799_v42 = vadd.f32 %v340_v55, %v1675_v51  ;;  %2427 = vst [vmem:[#allocation41_spill] sm:$0xff] %v1805_v18 }
  0x31   : > { %524 = vperm.xlu1 %1388, %v446_v15   ;;  %519 = vperm.xlu0 %1387, %v445_v16   ;;  %v342_v15 = vld [vmem:[%s1610_s6 + $0x138] sm:$0xff]  ;;  %v341_v31 = vld [vmem:[%s1610_s6 + $0x130] sm:$0xff]  ;;  %v1777_v35 = vld [vmem:[%s1605_s29 + $0x48] sm:$0xff]  ;;  %2424 = vst [vmem:[#allocation38_spill] sm:$0xff] %v1796_v44  ;;  %v1802_v41 = vadd.f32 %v356_v56, %v1678_v52  ;;  %v1821_v56 = vadd.f32 %v307_v1, %v1695_v61 }
  0x32   : > { %v358_v16 = vld [vmem:[%s1610_s6 + $0x1b8] sm:$0xff]  ;;  %v357_v32 = vld [vmem:[%s1610_s6 + $0x1b0] sm:$0xff]  ;;  %2419 = vst [vmem:[#allocation33_spill] sm:$0xff] %v1777_v35  ;;  %v1780_v36 = vld [vmem:[%s1605_s29 + $0xc8] sm:$0xff]  ;;  %v1824_v52 = vadd.f32 %v323_v2, %v1698_v62  ;;  %v1855_v44 = vadd.f32 %v342_v15, %v1727_v11 }
  0x33   : > { %2420 = vst [vmem:[#allocation34_spill] sm:$0xff] %v1780_v36  ;;  %v1783_v45 = vld [vmem:[%s1605_s29 + $0x148] sm:$0xff]  ;;  %2425 = vst [vmem:[#allocation39_spill] sm:$0xff] %v1799_v42  ;;  %v1808_v17 = vld [vmem:[%s1605_s29 + $0xc0] sm:$0xff]  ;;  %v1858_v48 = vadd.f32 %v358_v16, %v1730_v12  ;;  %v1877_v16 = vadd.f32 %v309_v29, %v1749_v23  ;;  %v1880_v12 = vadd.f32 %v325_v30, %v1752_v24 }
  0x34   : > { %2421 = vst [vmem:[#allocation35_spill] sm:$0xff] %v1783_v45  ;;  %v1786_v46 = vld [vmem:[%s1605_s29 + $0x1c8] sm:$0xff]  ;;  %2426 = vst [vmem:[#allocation40_spill] sm:$0xff] %v1802_v41  ;;  %v1811_v53 = vld [vmem:[%s1605_s29 + $0x140] sm:$0xff] }
  0x35   : > { %2422 = vst [vmem:[#allocation36_spill] sm:$0xff] %v1786_v46  ;;  %v312_v26 = vld [vmem:[%s1610_s6 + $0x48] sm:$0xff]  ;;  %2428 = vst [vmem:[#allocation42_spill] sm:$0xff] %v1808_v17  ;;  %v1814_v54 = vld [vmem:[%s1605_s29 + $0x1c0] sm:$0xff] }
  0x36   : > { %v328_v47 = vld [vmem:[%s1610_s6 + $0xc8] sm:$0xff]  ;;  %2429 = vst [vmem:[#allocation43_spill] sm:$0xff] %v1811_v53  ;;  %2430 = vst [vmem:[#allocation44_spill] sm:$0xff] %v1814_v54  ;;  %v311_v34 = vld [vmem:[%s1610_s6 + $0x40] sm:$0xff] }
  0x37   : > { %v344_v43 = vld [vmem:[%s1610_s6 + $0x148] sm:$0xff]  ;;  %v327_v55 = vld [vmem:[%s1610_s6 + $0xc0] sm:$0xff]  ;;  %2431 = vst [vmem:[#allocation45_spill] sm:$0xff] %v1821_v56  ;;  %2432 = vst [vmem:[#allocation46_spill] sm:$0xff] %v1824_v52 }
  0x38   : > { %v360_v25 = vld [vmem:[%s1610_s6 + $0x1c8] sm:$0xff]  ;;  %v343_v51 = vld [vmem:[%s1610_s6 + $0x140] sm:$0xff]  ;;  %2433 = vst [vmem:[#allocation47_spill] sm:$0xff] %v1827_v50  ;;  %2434 = vst [vmem:[#allocation48_spill] sm:$0xff] %v1830_v49 }
  0x39   : > { %v359_v33 = vld [vmem:[%s1610_s6 + $0x1c0] sm:$0xff]  ;;  %v1833_v41 = vld [vmem:[%s1605_s29 + $0x58] sm:$0xff]  ;;  %2439 = vst [vmem:[#allocation53_spill] sm:$0xff] %v1849_v4  ;;  %2440 = vst [vmem:[#allocation54_spill] sm:$0xff] %v1852_v0 }
  0x3a   : > { %2435 = vst [vmem:[#allocation49_spill] sm:$0xff] %v1833_v41  ;;  %v1836_v42 = vld [vmem:[%s1605_s29 + $0xd8] sm:$0xff]  ;;  %2441 = vst [vmem:[#allocation55_spill] sm:$0xff] %v1855_v44  ;;  %v1861_v49 = vld [vmem:[%s1605_s29 + $0x50] sm:$0xff]  ;;  %v1886_v44 = vadd.f32 %v357_v32, %v1758_v28  ;;  %v1905_v32 = vadd.f32 %v312_v26, %v1777_v35  ;;  %v1908_v28 = vadd.f32 %v328_v47, %v1780_v36 }
  0x3b   : > { %2436 = vst [vmem:[#allocation50_spill] sm:$0xff] %v1836_v42  ;;  %v1839_v1 = vld [vmem:[%s1605_s29 + $0x158] sm:$0xff]  ;;  %2442 = vst [vmem:[#allocation56_spill] sm:$0xff] %v1858_v48  ;;  %v1864_v50 = vld [vmem:[%s1605_s29 + $0xd0] sm:$0xff]  ;;  %v1883_v48 = vadd.f32 %v341_v31, %v1755_v27 }
  0x3c   : > { %2437 = vst [vmem:[#allocation51_spill] sm:$0xff] %v1839_v1  ;;  %v1842_v2 = vld [vmem:[%s1605_s29 + $0x1d8] sm:$0xff]  ;;  %2443 = vst [vmem:[#allocation57_spill] sm:$0xff] %v1861_v49  ;;  %v1867_v13 = vld [vmem:[%s1605_s29 + $0x150] sm:$0xff] }
  0x3d   : > { %2438 = vst [vmem:[#allocation52_spill] sm:$0xff] %v1842_v2  ;;  %v314_v62 = vld [vmem:[%s1610_s6 + $0x58] sm:$0xff]  ;;  %2444 = vst [vmem:[#allocation58_spill] sm:$0xff] %v1864_v50  ;;  %v1870_v14 = vld [vmem:[%s1605_s29 + $0x1d0] sm:$0xff] }
  0x3e   : > { %v330_v3 = vld [vmem:[%s1610_s6 + $0xd8] sm:$0xff]  ;;  %2445 = vst [vmem:[#allocation59_spill] sm:$0xff] %v1867_v13  ;;  %2446 = vst [vmem:[#allocation60_spill] sm:$0xff] %v1870_v14  ;;  %v313_v10 = vld [vmem:[%s1610_s6 + $0x50] sm:$0xff] }
  0x3f   : > { %v346_v63 = vld [vmem:[%s1610_s6 + $0x158] sm:$0xff]  ;;  %v329_v15 = vld [vmem:[%s1610_s6 + $0xd0] sm:$0xff]  ;;  %2447 = vst [vmem:[#allocation61_spill] sm:$0xff] %v1877_v16  ;;  %2448 = vst [vmem:[#allocation62_spill] sm:$0xff] %v1880_v12 }
  0x40   : > { %v362_v61 = vld [vmem:[%s1610_s6 + $0x1d8] sm:$0xff]  ;;  %v345_v11 = vld [vmem:[%s1610_s6 + $0x150] sm:$0xff]  ;;  %2449 = vst [vmem:[#allocation63_spill] sm:$0xff] %v1883_v48  ;;  %2450 = vst [vmem:[#allocation64_spill] sm:$0xff] %v1886_v44  ;;  %v1911_v44 = vadd.f32 %v344_v43, %v1783_v45  ;;  %v1914_v48 = vadd.f32 %v360_v25, %v1786_v46  ;;  %v1933_v25 = vadd.f32 %v311_v34, %v1805_v18 }
  0x41   : > { %v361_v9 = vld [vmem:[%s1610_s6 + $0x1d0] sm:$0xff]  ;;  %v1889_v0 = vld [vmem:[%s1605_s29 + $0x68] sm:$0xff]  ;;  %2454 = vst [vmem:[#allocation68_spill] sm:$0xff] %v1905_v32  ;;  %2455 = vst [vmem:[#allocation69_spill] sm:$0xff] %v1908_v28  ;;  %v1936_v46 = vadd.f32 %v327_v55, %v1808_v17 }
  0x42   : > { %v1892_v4 = vld [vmem:[%s1605_s29 + $0xe8] sm:$0xff]  ;;  %2456 = vst [vmem:[#allocation70_spill] sm:$0xff] %v1911_v44  ;;  %2457 = vst [vmem:[#allocation71_spill] sm:$0xff] %v1914_v48  ;;  %v1917_v12 = vld [vmem:[%s1605_s29 + $0x60] sm:$0xff]  ;;  %v1939_v48 = vadd.f32 %v343_v51, %v1811_v53  ;;  %v1942_v44 = vadd.f32 %v359_v33, %v1814_v54  ;;  %v1960_v51 = vadd.f32 %v314_v62, %v1833_v41 }
  0x43   : > { %2451 = vst [vmem:[#allocation65_spill] sm:$0xff] %v1892_v4  ;;  %v1895_v29 = vld [vmem:[%s1605_s29 + $0x168] sm:$0xff]  ;;  %2458 = vst [vmem:[#allocation72_spill] sm:$0xff] %v1917_v12  ;;  %v1920_v16 = vld [vmem:[%s1605_s29 + $0xe0] sm:$0xff]  ;;  %v1963_v33 = vadd.f32 %v330_v3, %v1836_v42  ;;  %v1966_v53 = vadd.f32 %v346_v63, %v1839_v1  ;;  %v1969_v54 = vadd.f32 %v362_v61, %v1842_v2 }
  0x44   : > { %2452 = vst [vmem:[#allocation66_spill] sm:$0xff] %v1895_v29  ;;  %v1898_v30 = vld [vmem:[%s1605_s29 + $0x1e8] sm:$0xff]  ;;  %2459 = vst [vmem:[#allocation73_spill] sm:$0xff] %v1920_v16  ;;  %v1923_v26 = vld [vmem:[%s1605_s29 + $0x160] sm:$0xff]  ;;  %v1979_v41 = vadd.f32 %v313_v10, %v1861_v49  ;;  %v1982_v3 = vadd.f32 %v329_v15, %v1864_v50  ;;  %v1985_v63 = vadd.f32 %v345_v11, %v1867_v13 }
  0x45   : > { %2453 = vst [vmem:[#allocation67_spill] sm:$0xff] %v1898_v30  ;;  %v316_v24 = vld [vmem:[%s1610_s6 + $0x68] sm:$0xff]  ;;  %2460 = vst [vmem:[#allocation74_spill] sm:$0xff] %v1923_v26  ;;  %v1926_v47 = vld [vmem:[%s1605_s29 + $0x1e0] sm:$0xff]  ;;  %v1988_v61 = vadd.f32 %v361_v9, %v1870_v14 }
  0x46   : > { %v332_v31 = vld [vmem:[%s1610_s6 + $0xe8] sm:$0xff]  ;;  %2461 = vst [vmem:[#allocation75_spill] sm:$0xff] %v1926_v47  ;;  %v315_v36 = vld [vmem:[%s1610_s6 + $0x60] sm:$0xff]  ;;  %2462 = vst [vmem:[#allocation76_spill] sm:$0xff] %v1936_v46 }
  0x47   : > { %v348_v27 = vld [vmem:[%s1610_s6 + $0x168] sm:$0xff]  ;;  %v331_v35 = vld [vmem:[%s1610_s6 + $0xe0] sm:$0xff]  ;;  %2463 = vst [vmem:[#allocation77_spill] sm:$0xff] %v1939_v48  ;;  %2464 = vst [vmem:[#allocation78_spill] sm:$0xff] %v1942_v44  ;;  %v2001_v10 = vadd.f32 %v332_v31, %v1892_v4  ;;  %v2013_v50 = vadd.f32 %v315_v36, %v1917_v12 }
  0x48   : > { %v364_v23 = vld [vmem:[%s1610_s6 + $0x1e8] sm:$0xff]  ;;  %v347_v43 = vld [vmem:[%s1610_s6 + $0x160] sm:$0xff]  ;;  %v1945_v28 = vld [vmem:[%s1605_s29 + $0x78] sm:$0xff]  ;;  %2467 = vst [vmem:[#allocation81_spill] sm:$0xff] %v1969_v54  ;;  %v1998_v54 = vadd.f32 %v316_v24, %v1889_v0  ;;  %v2004_v15 = vadd.f32 %v348_v27, %v1895_v29  ;;  %v2016_v49 = vadd.f32 %v331_v35, %v1920_v16 }
  0x49   : > { %v363_v45 = vld [vmem:[%s1610_s6 + $0x1e0] sm:$0xff]  ;;  %v1948_v32 = vld [vmem:[%s1605_s29 + $0xf8] sm:$0xff]  ;;  %v1973_v44 = vld [vmem:[%s1605_s29 + $0x70] sm:$0xff]  ;;  %v2007_v11 = vadd.f32 %v364_v23, %v1898_v30  ;;  %v2019_v24 = vadd.f32 %v347_v43, %v1923_v26 }
  0x4a   : > { %v1951_v52 = vld [vmem:[%s1605_s29 + $0x178] sm:$0xff]  ;;  %v1976_v48 = vld [vmem:[%s1605_s29 + $0xf0] sm:$0xff]  ;;  %v2022_v31 = vadd.f32 %v363_v45, %v1926_v47  ;;  %v2470_v12 = vld [vmem:[#allocation45_spill] sm:$0xff] }
  0x4b   : > { %2465 = vst [vmem:[#allocation79_spill] sm:$0xff] %v1951_v52  ;;  %v1954_v56 = vld [vmem:[%s1605_s29 + $0x1f8] sm:$0xff]  ;;  %v1991_v1 = vld [vmem:[%s1605_s29 + $0x170] sm:$0xff]  ;;  %v2474_v4 = vld [vmem:[#allocation37_spill] sm:$0xff] }
  0x4c   : > { %2466 = vst [vmem:[#allocation80_spill] sm:$0xff] %v1954_v56  ;;  %v318_v34 = vld [vmem:[%s1610_s6 + $0x78] sm:$0xff]  ;;  %2468 = vst [vmem:[#allocation82_spill] sm:$0xff] %v1991_v1  ;;  %v1994_v2 = vld [vmem:[%s1605_s29 + $0x1f0] sm:$0xff] }
  0x4d   : > { %v334_v18 = vld [vmem:[%s1610_s6 + $0xf8] sm:$0xff]  ;;  %2469 = vst [vmem:[#allocation83_spill] sm:$0xff] %v1994_v2  ;;  %v317_v42 = vld [vmem:[%s1610_s6 + $0x70] sm:$0xff]  ;;  %v2025_v27 = vadd.f32 %v318_v34, %v1945_v28 }
  0x4e   : > { %v350_v55 = vld [vmem:[%s1610_s6 + $0x178] sm:$0xff]  ;;  %v333_v13 = vld [vmem:[%s1610_s6 + $0xf0] sm:$0xff]  ;;  %v2028_v23 = vadd.f32 %v334_v18, %v1948_v32  ;;  %v2037_v43 = vadd.f32 %v317_v42, %v1973_v44 }
  0x4f   : > { %v366_v17 = vld [vmem:[%s1610_s6 + $0x1f8] sm:$0xff]  ;;  %v349_v9 = vld [vmem:[%s1610_s6 + $0x170] sm:$0xff]  ;;  %v2031_v29 = vadd.f32 %v350_v55, %v1951_v52  ;;  %v2040_v45 = vadd.f32 %v333_v13, %v1976_v48 }
  0x50   : > { %v365_v14 = vld [vmem:[%s1610_s6 + $0x1f0] sm:$0xff]  ;;  %v2034_v36 = vadd.f32 %v366_v17, %v1954_v56  ;;  %v2043_v34 = vadd.f32 %v349_v9, %v1991_v1 }
  0x51   : > { %v2046_v18 = vadd.f32 %v365_v14, %v1994_v2 }
  0x90   : > { %v460_v46 = vpop.permute.xlu1 %459  ;;  %v450_v62 = vpop.permute.xlu0 %449 }
  0x91   : > { %v527_v55 = vmul.f32 %v450_v62, %v1711_v5  ;;  %v543_v26 = vmul.f32 %v450_v62, %v1714_v6  ;;  %v559_v17 = vmul.f32 %v450_v62, %v1716_v7  ;;  %v575_v47 = vmul.f32 %v450_v62, %v1718_v8 }
  0x92   : > { %v529_v1 = vmul.f32 %v460_v46, %v1685_v57  ;;  %v545_v14 = vmul.f32 %v460_v46, %v1688_v58  ;;  %v561_v5 = vmul.f32 %v460_v46, %v1690_v59  ;;  %v577_v6 = vmul.f32 %v460_v46, %v1692_v60  ;;  %v2471_v46 = vld [vmem:[#allocation46_spill] sm:$0xff] }
  0x94   : > { %v465_v35 = vpop.permute.xlu1 %464  ;;  %v455_v30 = vpop.permute.xlu0 %454 }
  0x95   : > { %v528_v42 = vmul.f32 %v455_v30, %v1765_v37  ;;  %v544_v52 = vmul.f32 %v455_v30, %v1768_v38  ;;  %v560_v13 = vmul.f32 %v455_v30, %v1771_v39  ;;  %v576_v9 = vmul.f32 %v455_v30, %v1774_v40 }
  0x96   : > { %v530_v38 = vmul.f32 %v465_v35, %v1737_v19  ;;  %v546_v39 = vmul.f32 %v465_v35, %v1740_v20  ;;  %v562_v40 = vmul.f32 %v465_v35, %v1743_v21  ;;  %v578_v57 = vmul.f32 %v465_v35, %v1746_v22 }
  0x97   : > { %v591_v2 = vadd.f32 %v528_v42, %v527_v55  ;;  %v612_v7 = vadd.f32 %v544_v52, %v543_v26  ;;  %v633_v56 = vadd.f32 %v560_v13, %v559_v17  ;;  %v654_v8 = vadd.f32 %v576_v9, %v575_v47  ;;  %v2472_v26 = vld [vmem:[#allocation47_spill] sm:$0xff]  ;;  %v2473_v55 = vld [vmem:[#allocation48_spill] sm:$0xff] }
  0x98   : > { %v475_v62 = vpop.permute.xlu1 %474  ;;  %v470_v37 = vpop.permute.xlu0 %469 }
  0x99   : > { %v592_v30 = vadd.f32 %v591_v2, %v529_v1  ;;  %v613_v58 = vadd.f32 %v612_v7, %v545_v14  ;;  %v634_v16 = vadd.f32 %v633_v56, %v561_v5  ;;  %v655_v59 = vadd.f32 %v654_v8, %v577_v6  ;;  %v2475_v1 = vld [vmem:[#allocation38_spill] sm:$0xff]  ;;  %v2476_v56 = vld [vmem:[#allocation39_spill] sm:$0xff]  ;;  %v2477_v14 = vld [vmem:[#allocation40_spill] sm:$0xff] }
  0x9a   : > { %v531_v60 = vmul.f32 %v470_v37, %v2470_v12  ;;  %v547_v52 = vmul.f32 %v470_v37, %v2471_v46  ;;  %v563_v47 = vmul.f32 %v470_v37, %v2472_v26  ;;  %v579_v17 = vmul.f32 %v470_v37, %v2473_v55  ;;  %v2478_v46 = vld [vmem:[#allocation61_spill] sm:$0xff] }
  0x9b   : > { %v593_v42 = vadd.f32 %v592_v30, %v530_v38  ;;  %v614_v19 = vadd.f32 %v613_v58, %v546_v39  ;;  %v635_v13 = vadd.f32 %v634_v16, %v562_v40  ;;  %v656_v20 = vadd.f32 %v655_v59, %v578_v57  ;;  %v2479_v38 = vld [vmem:[#allocation62_spill] sm:$0xff]  ;;  %v2480_v16 = vld [vmem:[#allocation63_spill] sm:$0xff]  ;;  %v2481_v57 = vld [vmem:[#allocation64_spill] sm:$0xff] }
  0x9c   : > { %v485_v9 = vpop.permute.xlu1 %484  ;;  %v480_v21 = vpop.permute.xlu0 %479  ;;  %v532_v22 = vmul.f32 %v475_v62, %v2474_v4  ;;  %v548_v2 = vmul.f32 %v475_v62, %v2475_v1  ;;  %v564_v35 = vmul.f32 %v475_v62, %v2476_v56  ;;  %v580_v12 = vmul.f32 %v475_v62, %v2477_v14  ;;  %v2482_v56 = vld [vmem:[#allocation53_spill] sm:$0xff] }
  0x9d   : > { %v594_v5 = vadd.f32 %v593_v42, %v531_v60  ;;  %v615_v6 = vadd.f32 %v614_v19, %v547_v52  ;;  %v636_v7 = vadd.f32 %v635_v13, %v563_v47  ;;  %v657_v8 = vadd.f32 %v656_v20, %v579_v17  ;;  %v2483_v60 = vld [vmem:[#allocation54_spill] sm:$0xff]  ;;  %v2484_v47 = vld [vmem:[#allocation55_spill] sm:$0xff]  ;;  %v2485_v42 = vld [vmem:[#allocation56_spill] sm:$0xff] }
  0x9e   : > { %v533_v37 = vmul.f32 %v480_v21, %v2478_v46  ;;  %v549_v39 = vmul.f32 %v480_v21, %v2479_v38  ;;  %v565_v40 = vmul.f32 %v480_v21, %v2480_v16  ;;  %v581_v30 = vmul.f32 %v480_v21, %v2481_v57 }
  0x9f   : > { %v595_v58 = vadd.f32 %v594_v5, %v532_v22  ;;  %v616_v4 = vadd.f32 %v615_v6, %v548_v2  ;;  %v637_v59 = vadd.f32 %v636_v7, %v564_v35  ;;  %v658_v26 = vadd.f32 %v657_v8, %v580_v12  ;;  %v2486_v22 = vld [vmem:[#allocation76_spill] sm:$0xff]  ;;  %v2487_v35 = vld [vmem:[#allocation77_spill] sm:$0xff]  ;;  %v2488_v5 = vld [vmem:[#allocation78_spill] sm:$0xff] }
  0xa0   : > { %v495_v55 = vpop.permute.xlu1 %494  ;;  %v490_v1 = vpop.permute.xlu0 %489  ;;  %v534_v62 = vmul.f32 %v485_v9, %v2482_v56  ;;  %v550_v52 = vmul.f32 %v485_v9, %v2483_v60  ;;  %v566_v17 = vmul.f32 %v485_v9, %v2484_v47  ;;  %v582_v19 = vmul.f32 %v485_v9, %v2485_v42  ;;  %v2489_v60 = vld [vmem:[#allocation68_spill] sm:$0xff] }
  0xa1   : > { %v596_v13 = vadd.f32 %v595_v58, %v533_v37  ;;  %v617_v20 = vadd.f32 %v616_v4, %v549_v39  ;;  %v638_v14 = vadd.f32 %v637_v59, %v565_v40  ;;  %v659_v46 = vadd.f32 %v658_v26, %v581_v30  ;;  %v2490_v37 = vld [vmem:[#allocation69_spill] sm:$0xff]  ;;  %v2491_v40 = vld [vmem:[#allocation70_spill] sm:$0xff]  ;;  %v2492_v58 = vld [vmem:[#allocation71_spill] sm:$0xff] }
  0xa2   : > { %v535_v21 = vmul.f32 %v490_v1, %v1933_v25  ;;  %v551_v2 = vmul.f32 %v490_v1, %v2486_v22  ;;  %v567_v12 = vmul.f32 %v490_v1, %v2487_v35  ;;  %v583_v6 = vmul.f32 %v490_v1, %v2488_v5 }
  0xa3   : > { %v597_v7 = vadd.f32 %v596_v13, %v534_v62  ;;  %v618_v8 = vadd.f32 %v617_v20, %v550_v52  ;;  %v639_v38 = vadd.f32 %v638_v14, %v566_v17  ;;  %v660_v16 = vadd.f32 %v659_v46, %v582_v19 }
  0xa4   : > { %v505_v57 = vpop.permute.xlu1 %504  ;;  %v500_v56 = vpop.permute.xlu0 %499  ;;  %v536_v9 = vmul.f32 %v495_v55, %v2489_v60  ;;  %v552_v39 = vmul.f32 %v495_v55, %v2490_v37  ;;  %v568_v30 = vmul.f32 %v495_v55, %v2491_v40  ;;  %v584_v25 = vmul.f32 %v495_v55, %v2492_v58 }
  0xa5   : > { %v598_v4 = vadd.f32 %v597_v7, %v535_v21  ;;  %v619_v59 = vadd.f32 %v618_v8, %v551_v2  ;;  %v640_v26 = vadd.f32 %v639_v38, %v567_v12  ;;  %v661_v47 = vadd.f32 %v660_v16, %v583_v6  ;;  %v2493_v2 = vld [vmem:[#allocation81_spill] sm:$0xff] }
  0xa6   : > { %v537_v1 = vmul.f32 %v500_v56, %v1979_v41  ;;  %v553_v62 = vmul.f32 %v500_v56, %v1982_v3  ;;  %v569_v52 = vmul.f32 %v500_v56, %v1985_v63  ;;  %v585_v17 = vmul.f32 %v500_v56, %v1988_v61 }
  0xa7   : > { %v599_v42 = vadd.f32 %v598_v4, %v536_v9  ;;  %v620_v19 = vadd.f32 %v619_v59, %v552_v39  ;;  %v641_v13 = vadd.f32 %v640_v26, %v568_v30  ;;  %v662_v20 = vadd.f32 %v661_v47, %v584_v25 }
  0xa8   : > { %v515_v14 = vpop.permute.xlu1 %514  ;;  %v510_v46 = vpop.permute.xlu0 %509  ;;  %v538_v55 = vmul.f32 %v505_v57, %v1960_v51  ;;  %v554_v21 = vmul.f32 %v505_v57, %v1963_v33  ;;  %v570_v22 = vmul.f32 %v505_v57, %v1966_v53  ;;  %v586_v41 = vmul.f32 %v505_v57, %v2493_v2 }
  0xa9   : > { %v600_v35 = vadd.f32 %v599_v42, %v537_v1  ;;  %v621_v3 = vadd.f32 %v620_v19, %v553_v62  ;;  %v642_v12 = vadd.f32 %v641_v13, %v569_v52  ;;  %v663_v63 = vadd.f32 %v662_v20, %v585_v17 }
  0xaa   : > { %v539_v61 = vmul.f32 %v510_v46, %v2013_v50  ;;  %v555_v5 = vmul.f32 %v510_v46, %v2016_v49  ;;  %v571_v6 = vmul.f32 %v510_v46, %v2019_v24  ;;  %v587_v7 = vmul.f32 %v510_v46, %v2022_v31 }
  0xab   : > { %v601_v8 = vadd.f32 %v600_v35, %v538_v55  ;;  %v622_v51 = vadd.f32 %v621_v3, %v554_v21  ;;  %v643_v38 = vadd.f32 %v642_v12, %v570_v22  ;;  %v664_v33 = vadd.f32 %v663_v63, %v586_v41 }
  0xac   : > { %v520_v16 = vpop.permute.xlu0 %519  ;;  %v540_v53 = vmul.f32 %v515_v14, %v1998_v54  ;;  %v556_v57 = vmul.f32 %v515_v14, %v2001_v10  ;;  %v572_v56 = vmul.f32 %v515_v14, %v2004_v15  ;;  %v588_v60 = vmul.f32 %v515_v14, %v2007_v11  ;;  %v525_v24 = vpop.permute.xlu1 %524 }
  0xad   : > { %v602_v50 = vadd.f32 %v601_v8, %v539_v61  ;;  %v623_v9 = vadd.f32 %v622_v51, %v555_v5  ;;  %v644_v49 = vadd.f32 %v643_v38, %v571_v6  ;;  %v665_v37 = vadd.f32 %v664_v33, %v587_v7  ;;  %v2494_v8 = vld [vmem:[#allocation65_spill] sm:$0xff]  ;;  %v2500_v51 = vld [vmem:[#allocation58_spill] sm:$0xff] }
  0xae   : > { %v541_v31 = vmul.f32 %v520_v16, %v2037_v43  ;;  %v557_v39 = vmul.f32 %v520_v16, %v2040_v45  ;;  %v573_v40 = vmul.f32 %v520_v16, %v2043_v34  ;;  %v589_v30 = vmul.f32 %v520_v16, %v2046_v18  ;;  %v2501_v38 = vld [vmem:[#allocation33_spill] sm:$0xff]  ;;  %v2502_v33 = vld [vmem:[#allocation34_spill] sm:$0xff] }
  0xaf   : > { %v603_v54 = vadd.f32 %v602_v50, %v540_v53  ;;  %v624_v58 = vadd.f32 %v623_v9, %v556_v57  ;;  %v645_v10 = vadd.f32 %v644_v49, %v572_v56  ;;  %v666_v25 = vadd.f32 %v665_v37, %v588_v60  ;;  %v2503_v16 = vld [vmem:[#allocation41_spill] sm:$0xff]  ;;  %v2504_v53 = vld [vmem:[#allocation42_spill] sm:$0xff] }
  0xb0   : > { %v542_v15 = vmul.f32 %v525_v24, %v2025_v27  ;;  %v558_v11 = vmul.f32 %v525_v24, %v2028_v23  ;;  %v574_v4 = vmul.f32 %v525_v24, %v2031_v29  ;;  %v590_v59 = vmul.f32 %v525_v24, %v2034_v36  ;;  %v2505_v57 = vld [vmem:[#allocation25_spill] sm:$0xff]  ;;  %v2506_v56 = vld [vmem:[#allocation26_spill] sm:$0xff] }
  0xb1   : > { %v604_v26 = vadd.f32 %v603_v54, %v541_v31  ;;  %v625_v43 = vadd.f32 %v624_v58, %v557_v39  ;;  %v646_v47 = vadd.f32 %v645_v10, %v573_v40  ;;  %v667_v45 = vadd.f32 %v666_v25, %v589_v30  ;;  %v2507_v60 = vld [vmem:[#allocation29_spill] sm:$0xff]  ;;  %v2508_v50 = vld [vmem:[#allocation30_spill] sm:$0xff]  ;;  %v2519_v10 = vld [vmem:[#allocation7_spill] sm:$0xff] }
  0xb2   : > { %v1472_v7 = vmov 0.0   ;;  %v2509_v9 = vld [vmem:[#allocation17_spill] sm:$0xff]  ;;  %v2510_v49 = vld [vmem:[#allocation18_spill] sm:$0xff]  ;;  %v2520_v25 = vld [vmem:[#allocation8_spill] sm:$0xff] }
  0xb3   : > { %v605_v1 = vadd.f32 %v604_v26, %v542_v15  ;;  %v626_v34 = vadd.f32 %v625_v43, %v558_v11  ;;  %v647_v62 = vadd.f32 %v646_v47, %v574_v4  ;;  %v668_v18 = vadd.f32 %v667_v45, %v590_v59  ;;  %1203 = vmatprep.subr.mxu0 %v1472_v7  ;;  %v2511_v37 = vld [vmem:[#allocation21_spill] sm:$0xff]  ;;  %v2512_v24 = vld [vmem:[#allocation22_spill] sm:$0xff] }
  0xb4   : > { %1238 = vmatprep.subr.mxu1 %v1472_v7  ;;  %1204 = vmatpush3.xpose.msra.mxu0 %v1945_v28  ;;  %v2495_v28 = vld [vmem:[#allocation72_spill] sm:$0xff]  ;;  %v2513_v31 = vld [vmem:[#allocation9_spill] sm:$0xff]  ;;  %v2514_v39 = vld [vmem:[#allocation10_spill] sm:$0xff] }
  0xb5   : > { %v627_v52 = vrot.slane %v626_v34, 4  ;;  %v606_v17 = vrot.slane %v605_v1, 4  ;;  %v648_v42 = vrot.slane %v647_v62, 4  ;;  %v669_v19 = vrot.slane %v668_v18, 4  ;;  %1239 = vmatpush3.xpose.msra.mxu1 %v1948_v32  ;;  %1205 = vmatprep.subr.mxu0 %v1472_v7  ;;  %v2496_v32 = vld [vmem:[#allocation73_spill] sm:$0xff]  ;;  %v2516_v30 = vld [vmem:[#allocation6_spill] sm:$0xff] }
  0xb6   : > { %1240 = vmatprep.subr.mxu1 %v1472_v7  ;;  %v2515_v40 = vld [vmem:[#allocation5_spill] sm:$0xff]  ;;  %v2518_v58 = vld [vmem:[#allocation14_spill] sm:$0xff]  ;;  %1235 = vmatprep.mubr.msk.f32.mxu0 %vm1473_vm0, %v1472_v7 }
  0xb7   : > { %v628_v27 = vadd.f32 %v627_v52, %v626_v34  ;;  %v607_v13 = vadd.f32 %v606_v17, %v605_v1  ;;  %v649_v23 = vadd.f32 %v648_v42, %v647_v62  ;;  %v670_v20 = vadd.f32 %v669_v19, %v668_v18  ;;  %v2517_v54 = vld [vmem:[#allocation13_spill] sm:$0xff]  ;;  %1270 = vmatprep.mubr.msk.f32.mxu1 %vm1473_vm0, %v1472_v7 }
  0xb8   : > { %1206 = vmatpush3.xpose.msra.mxu0 %v1973_v44  ;;  %v2497_v44 = vld [vmem:[#allocation49_spill] sm:$0xff] }
  0xb9   : > { %v629_v29 = vrot.slane %v628_v27, 2  ;;  %v608_v14 = vrot.slane %v607_v13, 2  ;;  %v650_v36 = vrot.slane %v649_v23, 2  ;;  %v671_v46 = vrot.slane %v670_v20, 2  ;;  %1241 = vmatpush3.xpose.msra.mxu1 %v1976_v48  ;;  %1207 = vmatprep.subr.mxu0 %v1472_v7  ;;  %v2498_v48 = vld [vmem:[#allocation50_spill] sm:$0xff] }
  0xba   : > { %1242 = vmatprep.subr.mxu1 %v1472_v7 }
  0xbb   : > { %v630_v55 = vadd.f32 %v629_v29, %v628_v27  ;;  %v609_v21 = vadd.f32 %v608_v14, %v607_v13  ;;  %v651_v22 = vadd.f32 %v650_v36, %v649_v23  ;;  %v672_v2 = vadd.f32 %v671_v46, %v670_v20  ;;  %v2521_v36 = vld [vmem:[#allocation80_spill] sm:$0xff]  ;;  %v2522_v46 = vld [vmem:[#allocation79_spill] sm:$0xff] }
  0xbc   : > { %1208 = vmatpush3.xpose.msra.mxu0 %v1889_v0  ;;  %v2499_v0 = vld [vmem:[#allocation57_spill] sm:$0xff] }
  0xbd   : > { %v631_v41 = vrot.slane %v630_v55, 1  ;;  %v610_v35 = vrot.slane %v609_v21, 1  ;;  %v652_v3 = vrot.slane %v651_v22, 1  ;;  %v673_v12 = vrot.slane %v672_v2, 1  ;;  %1243 = vmatpush3.xpose.msra.mxu1 %v2494_v8  ;;  %1209 = vmatprep.subr.mxu0 %v1472_v7  ;;  %v2535_v8 = vld [vmem:[#allocation44_spill] sm:$0xff] }
  0xbe   : > { %1244 = vmatprep.subr.mxu1 %v1472_v7 }
  0xbf   : > { %v2116_v63 = vadd.f32 %v631_v41, %v630_v55  ;;  %v2118_v61 = vadd.f32 %v610_v35, %v609_v21  ;;  %v2123_v5 = vadd.f32 %v652_v3, %v651_v22  ;;  %v2126_v6 = vadd.f32 %v673_v12, %v672_v2  ;;  %v2523_v55 = vld [vmem:[#allocation83_spill] sm:$0xff]  ;;  %v2524_v21 = vld [vmem:[#allocation82_spill] sm:$0xff]  ;;  %v2529_v3 = vld [vmem:[#allocation52_spill] sm:$0xff] }
  0xc0   : > { %1210 = vmatpush3.xpose.msra.mxu0 %v2495_v28  ;;  %v2525_v22 = vld [vmem:[#allocation67_spill] sm:$0xff]  ;;  %v2526_v2 = vld [vmem:[#allocation66_spill] sm:$0xff] }
  0xc1   : > { %681 = vmax.xlane.f32.xlu1 %v2116_v63  ;;  %679 = vmax.xlane.f32.xlu0 %v2118_v61  ;;  %675 = vst [vmem:[%s236_s9] sm:$0x1] %v2118_v61  ;;  %676 = vst [vmem:[%s236_s9 + $0x1] sm:$0x1] %v2116_v63  ;;  %v2527_v41 = vld [vmem:[#allocation75_spill] sm:$0xff]  ;;  %v2528_v35 = vld [vmem:[#allocation74_spill] sm:$0xff] }
  0xc2   : > { %677 = vst [vmem:[%s236_s9 + $0x2] sm:$0x1] %v2123_v5  ;;  %678 = vst [vmem:[%s236_s9 + $0x3] sm:$0x1] %v2126_v6  ;;  %1245 = vmatpush3.xpose.msra.mxu1 %v2496_v32  ;;  %1211 = vmatprep.subr.mxu0 %v1472_v7  ;;  %v2530_v12 = vld [vmem:[#allocation51_spill] sm:$0xff]  ;;  %v2537_v32 = vld [vmem:[#allocation28_spill] sm:$0xff] }
  0xc3   : > { %1246 = vmatprep.subr.mxu1 %v1472_v7  ;;  %v2536_v28 = vld [vmem:[#allocation43_spill] sm:$0xff] }
  0xc4   : > { %1212 = vmatpush3.xpose.msra.mxu0 %v2497_v44  ;;  %v2538_v44 = vld [vmem:[#allocation27_spill] sm:$0xff] }
  0xc5   : > { %683 = vmax.xlane.f32.xlu0 %v2123_v5  ;;  %1213 = vmatprep.subr.mxu0 %v1472_v7 }
  0xc6   : > { %1247 = vmatpush3.xpose.msra.mxu1 %v2498_v48  ;;  %v2539_v48 = vld [vmem:[#allocation32_spill] sm:$0xff] }
  0xc7   : > { %1248 = vmatprep.subr.mxu1 %v1472_v7 }
  0xc8   : > { %1214 = vmatpush3.xpose.msra.mxu0 %v2499_v0  ;;  %v2540_v0 = vld [vmem:[#allocation31_spill] sm:$0xff] }
  0xc9   : > { %685 = vmax.xlane.f32.xlu0 %v2126_v6  ;;  %1215 = vmatprep.subr.mxu0 %v1472_v7 }
  0xca   : > { %1249 = vmatpush3.xpose.msra.mxu1 %v2500_v51  ;;  %v2541_v51 = vld [vmem:[#allocation20_spill] sm:$0xff] }
  0xcb   : > { %1250 = vmatprep.subr.mxu1 %v1472_v7 }
  0xcc   : > { %1216 = vmatpush3.xpose.msra.mxu0 %v2501_v38  ;;  %v2542_v38 = vld [vmem:[#allocation19_spill] sm:$0xff] }
  0xcd   : > { %1217 = vmatprep.subr.mxu0 %v1472_v7 }
  0xce   : > { %1251 = vmatpush3.xpose.msra.mxu1 %v2502_v33 }
  0xcf   : > { %1252 = vmatprep.subr.mxu1 %v1472_v7 }
  0xd0   : > { %1218 = vmatpush3.xpose.msra.mxu0 %v2503_v16 }
  0xd1   : > { %1219 = vmatprep.subr.mxu0 %v1472_v7 }
  0xd2   : > { %1253 = vmatpush3.xpose.msra.mxu1 %v2504_v53  ;;  %v2543_v53 = vld [vmem:[#allocation24_spill] sm:$0xff] }
  0xd3   : > { %1254 = vmatprep.subr.mxu1 %v1472_v7 }
  0xd4   : > { %1220 = vmatpush3.xpose.msra.mxu0 %v2505_v57  ;;  %v2544_v57 = vld [vmem:[#allocation23_spill] sm:$0xff] }
  0xd5   : > { %1221 = vmatprep.subr.mxu0 %v1472_v7 }
  0xd6   : > { %1255 = vmatpush3.xpose.msra.mxu1 %v2506_v56  ;;  %v2545_v56 = vld [vmem:[#allocation12_spill] sm:$0xff] }
  0xd7   : > { %1256 = vmatprep.subr.mxu1 %v1472_v7 }
  0xd8   : > { %1222 = vmatpush3.xpose.msra.mxu0 %v2507_v60  ;;  %v2546_v60 = vld [vmem:[#allocation11_spill] sm:$0xff] }
  0xd9   : > { %1223 = vmatprep.subr.mxu0 %v1472_v7 }
  0xda   : > { %1257 = vmatpush3.xpose.msra.mxu1 %v2508_v50  ;;  %v1405_v50 = vld [vmem:[%s1605_s29 + $0x190] sm:$0xff] }
  0xdb   : > { %1258 = vmatprep.subr.mxu1 %v1472_v7 }
  0xdc   : > { %1224 = vmatpush3.xpose.msra.mxu0 %v2509_v9  ;;  %v1406_v9 = vld [vmem:[%s1605_s29 + $0x110] sm:$0xff] }
  0xdd   : > { %1225 = vmatprep.subr.mxu0 %v1472_v7 }
  0xde   : > { %1259 = vmatpush3.xpose.msra.mxu1 %v2510_v49  ;;  %v2547_v49 = vld [vmem:[#allocation16_spill] sm:$0xff] }
  0xdf   : > { %1260 = vmatprep.subr.mxu1 %v1472_v7 }
  0xe0   : > { %1226 = vmatpush3.xpose.msra.mxu0 %v2511_v37  ;;  %v2548_v37 = vld [vmem:[#allocation15_spill] sm:$0xff] }
  0xe1   : > { %1227 = vmatprep.subr.mxu0 %v1472_v7 }
  0xe2   : > { %1261 = vmatpush3.xpose.msra.mxu1 %v2512_v24 }
  0xe3   : > { %1262 = vmatprep.subr.mxu1 %v1472_v7 }
  0xe4   : > { %1228 = vmatpush3.xpose.msra.mxu0 %v2513_v31 }
  0xe5   : > { %1229 = vmatprep.subr.mxu0 %v1472_v7 }
  0xe6   : > { %1263 = vmatpush3.xpose.msra.mxu1 %v2514_v39  ;;  %v1407_v39 = vld [vmem:[%s1605_s29 + $0x180] sm:$0xff] }
  0xe7   : > { %1264 = vmatprep.subr.mxu1 %v1472_v7 }
  0xe8   : > { %1230 = vmatpush3.xpose.msra.mxu0 %v2515_v40  ;;  %v1408_v40 = vld [vmem:[%s1605_s29 + $0x100] sm:$0xff]  ;;  %s1413_s29 = sshll.u32 %s1474_s19, 4  ;;  %s1414_s29 = int_to_ptr.vmem [resolvable:$false] %s1413_s29 }
  0xe9   : > { %1231 = vmatprep.subr.mxu0 %v1472_v7  ;;  %s1415_s30 = scalar_lea.vmem %s1414_s29, 128  ;;  %p1416_p0 = scmp.lt.s32.totalorder %s2282_s13, %s1414_s29 }
  0xea   : > { %1265 = vmatpush3.xpose.msra.mxu1 %v2516_v30  ;;  %p1417_p1 = scmp.lt.s32.totalorder %s1415_s30, %s1409_s28 }
  0xeb   : > { %1266 = vmatprep.subr.mxu1 %v1472_v7 }
  0xec   : > { %1232 = vmatpush3.xpose.msra.mxu0 %v2517_v54  ;;  %p1418_p2 = por %p1417_p1, %p1416_p0 }
  0xed   : > { %1233 = vmatprep.subr.mxu0 %v1472_v7 }
  0xee   : > { %1267 = vmatpush3.xpose.msra.mxu1 %v2518_v58  ;;  %p1419_p3 = pnand %p1418_p2, %p1412_p13 }
  0xef   : > { %1268 = vmatprep.subr.mxu1 %v1472_v7 }
  0xf0   : > { %1234 = vmatpush3.xpose.msra.mxu0 %v2519_v10 }
  0xf1   : > { %1273 = vmatprep.subr.mxu0 %v1472_v7 }
  0xf2   : > { %1269 = vmatpush3.xpose.msra.mxu1 %v2520_v25 }
  0xf3   : > { %1308 = vmatprep.subr.mxu1 %v1472_v7 }
 0x14a   : > { %v682_v15 = vpop.xlane.xlu1 %681  ;;  %v680_v11 = vpop.xlane.xlu0 %679 }
 0x14b   : > { %v688_v4 = vsub.f32 %v2116_v63, %v682_v15  ;;  %v687_v59 = vsub.f32 %v2118_v61, %v680_v11  ;;  %v2531_v63 = vld [vmem:[#allocation60_spill] sm:$0xff]  ;;  %v2532_v61 = vld [vmem:[#allocation59_spill] sm:$0xff] }
 0x14d   : > { %v693_v26 = vmul.f32 1.442695, %v688_v4  ;;  %v691_v43 = vmul.f32 1.442695, %v687_v59 }
 0x14e   : > { %v684_v47 = vpop.xlane.xlu0 %683 }
 0x14f   : > { %1389 = vpow2.f32 %v693_v26  ;;  %v689_v45 = vsub.f32 %v2123_v5, %v684_v47  ;;  %v2533_v5 = vld [vmem:[#allocation36_spill] sm:$0xff] }
 0x150   : > { %1391 = vpow2.f32 %v691_v43 }
 0x151   : > { %v695_v1 = vmul.f32 1.442695, %v689_v45 }
 0x152   : > { %v686_v34 = vpop.xlane.xlu0 %685 }
 0x153   : > { %1393 = vpow2.f32 %v695_v1  ;;  %v690_v62 = vsub.f32 %v2126_v6, %v686_v34  ;;  %v2534_v6 = vld [vmem:[#allocation35_spill] sm:$0xff] }
 0x155   : > { %v697_v18 = vmul.f32 1.442695, %v690_v62 }
 0x157   : > { %1395 = vpow2.f32 %v697_v18 }
 0x15c   : > { %v1390_v52 = vpop.eup %1389 }
 0x15d   : > { %v1392_v17 = vpop.eup %1391  ;;  %701 = vadd.xlane.f32.xlu0 %v1390_v52 }
 0x15e   : > { %699 = vadd.xlane.f32.xlu1 %v1392_v17 }
 0x160   : > { %v2202_v42 = vpop.eup %1393 }
 0x162   : > { %703 = vadd.xlane.f32.xlu1 %v2202_v42 }
 0x164   : > { %v2205_v19 = vpop.eup %1395 }
 0x165   : > { %705 = vadd.xlane.f32.xlu0 %v2205_v19 }
 0x1e6   : > { %v702_v27 = vpop.xlane.xlu0 %701 }
 0x1e7   : > { %v700_v13 = vpop.xlane.xlu1 %699  ;;  %1397 = vrcp.f32 %v702_v27 }
 0x1e8   : > { %1399 = vrcp.f32 %v700_v13 }
 0x1eb   : > { %v704_v16 = vpop.xlane.xlu1 %703 }
 0x1ee   : > { %v706_v33 = vpop.xlane.xlu0 %705 }
 0x1ef   : > { %1401 = vrcp.f32 %v706_v33 }
 0x1f0   : > { %1403 = vrcp.f32 %v704_v16 }
 0x1f4   : > { %v1398_v23 = vpop.eup %1397 }
 0x1f5   : > { %v1400_v20 = vpop.eup %1399  ;;  %v712_v29 = vmul.f32 %v1398_v23, %v1390_v52 }
 0x1f6   : > { %v711_v14 = vmul.f32 %v1400_v20, %v1392_v17 }
 0x1f7   : > { %1271 = vmatmul.mubr.f32.vlgmr.msra.gmra.mxu1 %v712_v29 }
 0x1f8   : > { %1236 = vmatmul.mubr.f32.vlgmr.msra.gmra.mxu0 %v711_v14  ;;  %1309 = vmatpush3.xpose.msra.mxu1 %v2521_v36 }
 0x1f9   : > { %1274 = vmatpush3.xpose.msra.mxu0 %v2522_v46  ;;  %1310 = vmatprep.subr.mxu1 %v1472_v7 }
 0x1fa   : > { %1275 = vmatprep.subr.mxu0 %v1472_v7  ;;  %1305 = vmatprep.mubr.msk.f32.mxu0 %vm1473_vm0, %v1472_v7 }
 0x1fb   : > { %1340 = vmatprep.mubr.msk.f32.mxu1 %vm1473_vm0, %v1472_v7 }
 0x1fc   : > { %1311 = vmatpush3.xpose.msra.mxu1 %v2523_v55  ;;  %v1402_v24 = vpop.eup %1401 }
 0x1fd   : > { %1276 = vmatpush3.xpose.msra.mxu0 %v2524_v21  ;;  %1312 = vmatprep.subr.mxu1 %v1472_v7  ;;  %v1404_v31 = vpop.eup %1403  ;;  %v714_v30 = vmul.f32 %v1402_v24, %v2205_v19 }
 0x1fe   : > { %1277 = vmatprep.subr.mxu0 %v1472_v7  ;;  %v713_v54 = vmul.f32 %v1404_v31, %v2202_v42 }
 0x200   : > { %1313 = vmatpush3.xpose.msra.mxu1 %v2525_v22 }
 0x201   : > { %1278 = vmatpush3.xpose.msra.mxu0 %v2526_v2  ;;  %1314 = vmatprep.subr.mxu1 %v1472_v7 }
 0x202   : > { %1279 = vmatprep.subr.mxu0 %v1472_v7 }
 0x204   : > { %1315 = vmatpush3.xpose.msra.mxu1 %v2527_v41 }
 0x205   : > { %1280 = vmatpush3.xpose.msra.mxu0 %v2528_v35  ;;  %1316 = vmatprep.subr.mxu1 %v1472_v7 }
 0x206   : > { %1281 = vmatprep.subr.mxu0 %v1472_v7 }
 0x208   : > { %1317 = vmatpush3.xpose.msra.mxu1 %v2529_v3 }
 0x209   : > { %1282 = vmatpush3.xpose.msra.mxu0 %v2530_v12  ;;  %1318 = vmatprep.subr.mxu1 %v1472_v7 }
 0x20a   : > { %1283 = vmatprep.subr.mxu0 %v1472_v7 }
 0x20c   : > { %1319 = vmatpush3.xpose.msra.mxu1 %v2531_v63 }
 0x20d   : > { %1284 = vmatpush3.xpose.msra.mxu0 %v2532_v61  ;;  %1320 = vmatprep.subr.mxu1 %v1472_v7 }
 0x20e   : > { %1285 = vmatprep.subr.mxu0 %v1472_v7 }
 0x210   : > { %1321 = vmatpush3.xpose.msra.mxu1 %v2533_v5 }
 0x211   : > { %1286 = vmatpush3.xpose.msra.mxu0 %v2534_v6  ;;  %1322 = vmatprep.subr.mxu1 %v1472_v7 }
 0x212   : > { %1287 = vmatprep.subr.mxu0 %v1472_v7 }
 0x214   : > { %1323 = vmatpush3.xpose.msra.mxu1 %v2535_v8 }
 0x215   : > { %1288 = vmatpush3.xpose.msra.mxu0 %v2536_v28  ;;  %1324 = vmatprep.subr.mxu1 %v1472_v7 }
 0x216   : > { %1289 = vmatprep.subr.mxu0 %v1472_v7 }
 0x218   : > { %1325 = vmatpush3.xpose.msra.mxu1 %v2537_v32 }
 0x219   : > { %1290 = vmatpush3.xpose.msra.mxu0 %v2538_v44  ;;  %1326 = vmatprep.subr.mxu1 %v1472_v7 }
 0x21a   : > { %1291 = vmatprep.subr.mxu0 %v1472_v7 }
 0x21c   : > { %1327 = vmatpush3.xpose.msra.mxu1 %v2539_v48 }
 0x21d   : > { %1292 = vmatpush3.xpose.msra.mxu0 %v2540_v0  ;;  %1328 = vmatprep.subr.mxu1 %v1472_v7 }
 0x21e   : > { %1293 = vmatprep.subr.mxu0 %v1472_v7 }
 0x220   : > { %1329 = vmatpush3.xpose.msra.mxu1 %v2541_v51 }
 0x221   : > { %1294 = vmatpush3.xpose.msra.mxu0 %v2542_v38  ;;  %1330 = vmatprep.subr.mxu1 %v1472_v7 }
 0x222   : > { %1295 = vmatprep.subr.mxu0 %v1472_v7 }
 0x224   : > { %1331 = vmatpush3.xpose.msra.mxu1 %v2543_v53 }
 0x225   : > { %1296 = vmatpush3.xpose.msra.mxu0 %v2544_v57  ;;  %1332 = vmatprep.subr.mxu1 %v1472_v7 }
 0x226   : > { %1297 = vmatprep.subr.mxu0 %v1472_v7 }
 0x228   : > { %1333 = vmatpush3.xpose.msra.mxu1 %v2545_v56 }
 0x229   : > { %1298 = vmatpush3.xpose.msra.mxu0 %v2546_v60  ;;  %1334 = vmatprep.subr.mxu1 %v1472_v7 }
 0x22a   : > { %1299 = vmatprep.subr.mxu0 %v1472_v7 }
 0x22c   : > { %1335 = vmatpush3.xpose.msra.mxu1 %v1405_v50 }
 0x22d   : > { %1300 = vmatpush3.xpose.msra.mxu0 %v1406_v9  ;;  %1336 = vmatprep.subr.mxu1 %v1472_v7 }
 0x22e   : > { %1301 = vmatprep.subr.mxu0 %v1472_v7 }
 0x230   : > { %1337 = vmatpush3.xpose.msra.mxu1 %v2547_v49 }
 0x231   : > { %1302 = vmatpush3.xpose.msra.mxu0 %v2548_v37  ;;  %1338 = vmatprep.subr.mxu1 %v1472_v7 }
 0x232   : > { %1303 = vmatprep.subr.mxu0 %v1472_v7 }
 0x234   : > { %1339 = vmatpush3.xpose.msra.mxu1 %v1407_v39 }
 0x235   : > { %1304 = vmatpush3.xpose.msra.mxu0 %v1408_v40 }
 0x237   : > { %1341 = vmatmul.mubr.f32.vlgmr.msra.gmra.mxu1 %v714_v30 }
 0x238   : > { %1306 = vmatmul.mubr.f32.vlgmr.msra.gmra.mxu0 %v713_v54 }
 0x2b7   : > { %v851_v58 = vpop.f32.mrf.mxu1 }
 0x2b8   : > { %v781_v10 = vpop.f32.mrf.mxu0  ;;  %996 = vst [vmem:[%s218_s12 + $0x1] sm:$0x1] %v851_v58 }
 0x2b9   : > { %995 = vst [vmem:[%s218_s12] sm:$0x1] %v781_v10  ;;  %v1272_v7 = vpop.f32.mrf.mxu1 }
 0x2ba   : > { %v1237_v25 = vpop.f32.mrf.mxu0 }
 0x2f7   : > { %v991_v15 = vpop.f32.mrf.mxu1 }
 0x2f8   : > { %v921_v11 = vpop.f32.mrf.mxu0  ;;  %998 = vst [vmem:[%s218_s12 + $0x3] sm:$0x1] %v991_v15 }
 0x2f9   : > { %997 = vst [vmem:[%s218_s12 + $0x2] sm:$0x1] %v921_v11  ;;  %v1342_v4 = vpop.f32.mrf.mxu1 }
 0x2fa   : > { %v1307_v59 = vpop.f32.mrf.mxu0 }
 0x2fb   : > { %1422 = shalt.err (!%p1419_p3)
}
 0x2fc   : > { %s1423_s5 = scalar_lea.hbm %s2287_s23, 64  ;;  %s1427_s8 = scalar_lea.hbm %s2333_s4, 128 }
 0x2fd   : > { %p1424_p4 = scmp.ne.s32.totalorder %s2287_s23, %s1423_s5  ;;  %p1428_p9 = scmp.lt.s32.totalorder %s2287_s23, %s2333_s4 }
 0x2fe   : > { %p1429_p10 = scmp.lt.s32.totalorder %s1427_s8, %s1423_s5 }
 0x2ff   : > { %p1425_p7 = pnand %p1424_p4, %p1540_p5 }
 0x300   : > { %p1430_p11 = por %p1429_p10, %p1428_p9 }
 0x301   : > { %p1426_p8 = pneg %p1425_p7 }
 0x303   : > { %p1431_p12 = pnand %p1430_p11, %p1426_p8 }
 0x305   : > { %1434 = shalt.err (!%p1431_p12)
}
 0x306   : > { %s1475_s11 = smov 16   ;;  %s1476_s12 = smov 1  }
 0x307   : > { %1343 = dma.vmem_to_hbm [thread:$0]  (%p1540_p5), %s2282_s13, 64, %s2287_s23, %s2289_s27, %s1475_s11, %s1475_s11, %s1476_s12  }
 0x308 PF: > { %p1349_p13 = scmp.ge.s32.totalorder %s1469_s18, 2  ;;  %s1043_s14 = sand.u32 1, %s1457_s15  }
 0x309   : > { %s1044_s20 = scalar_lea.sflag [#allocation3], %s1043_s14 }
 0x30a   : > { %p1346_p0 = pnand %p1349_p13, %p1544_p6 }
 0x30c   : > { %p1347_p1 = pneg %p1346_p0 }
 0x30e   : > { %1452 = dma.done.wait (%p1347_p1), %s1044_s20, 64  }
 0x30f   : > { %1454 = vsyncadd (%p1347_p1), %s1044_s20, 4294967232  ;;  %p15_p2 = scmp.ge.s32.totalorder %s1527_s21, 4   ;;  %s2549_s15 = smov %s1461_s16 }
 0x310   : > { %s2550_s16 = smov %s1465_s17  ;;  %s2551_s17 = smov %s1538_s24 }
 0x311   : > { %s2552_s18 = smov %s1527_s21  ;;  %17 = sbr.rel (!%p15_p2) target bundleno = 3 (0x3), region = 82 }
 0x316   :  { %1049 = vsyncpa [#allocation3], 1 }
 0x317   :  { %1051 = vsyncpa [#allocation3 + $0x1], 1 }

</bundles_post_ra>
